<compile_context>
chip_gen: v5e
topology: v5e:2x2
jax: 0.10.0
libtpu: 0.0.40
codegen_flags: <defaults>
</compile_context>

<pallas_src>
import functools

import jax
import jax.numpy as jnp
from jax.experimental import pallas as pl
from jax.experimental.pallas import tpu as pltpu

LANE = 128       # feature dims padded to multiples of this (lane-dense matmuls & stores)
SUBLANE = 16     # batch tiles padded to multiples of this (covers f32 and bf16 packing)


def _round_up(v: int, m: int) -> int:
    return (v + m - 1) // m * m


def _cdiv(a: int, b: int) -> int:
    return (a + b - 1) // b


@functools.lru_cache(maxsize=1)
def _vmem_capacity_bytes() -> int:
    """Per-core VMEM capacity; conservative 64 MiB fallback if the query is unavailable."""
    try:
        cap = int(pltpu.get_tpu_info().vmem_capacity_bytes)
        if cap > 0:
            return cap
    except Exception:
        pass
    return 64 * 1024 * 1024


def _vmem_budget_bytes() -> int:
    return int(0.6 * _vmem_capacity_bytes())


def _vmem_limit_bytes(need: int) -> int:
    cap = _vmem_capacity_bytes()
    return max(32 * 1024 * 1024, min(int(0.85 * cap), int(need * 1.3)))


# ---------------------------------------------------------------------------
# Fused all-layers kernel (weights VMEM-resident)
# ---------------------------------------------------------------------------

def _make_fused_kernel(num_layers: int):
    """Kernel refs: (x, w0, b0, w1, b1, ..., out)."""

    def kernel(*refs):
        x_ref = refs[0]
        out_ref = refs[-1]
        p = refs[1:-1]

        # In-kernel cast (no-op if already bf16). Keeps the x HBM stream at its native width.
        h = x_ref[...].astype(jnp.bfloat16)
        for i in range(num_layers):
            w = p[2 * i][...]                       # bf16 (Din_pad, Dout_pad), VMEM-resident
            b = p[2 * i + 1][...]                   # f32  (1, Dout_pad)
            acc = jnp.dot(h, w, preferred_element_type=jnp.float32) + b
            if i < num_layers - 1:
                h = jnp.maximum(acc, 0.0).astype(jnp.bfloat16)   # ReLU in f32, bf16 for MXU
            else:
                out_ref[...] = acc.astype(out_ref.dtype)

    return kernel


def _pick_batch_tile(b_padded, pdims, n_layers, in_bytes, sublane, budget):
    """Largest batch tile whose footprint fits the budget; weights are single-buffered."""
    weight_bytes = sum(pdims[i] * pdims[i + 1] * 2 + pdims[i + 1] * 4
                       for i in range(n_layers))          # resident bf16 W + f32 b (Buffered(1))
    max_w = max(pdims)
    tb, need, feasible = sublane, 0, False
    for cand in (2048, 1024, 512, 256, 128, 64, 32, 16, 8):
        tb = _round_up(max(min(cand, b_padded), sublane), sublane)
        need = (2 * tb * pdims[0] * in_bytes       # double-buffered input tiles
                + 2 * tb * pdims[-1] * 4           # double-buffered f32 output tiles
                + weight_bytes                     # resident weights + biases
                + 3 * tb * max_w * 4)              # live f32 activation headroom
        if need <= budget:
            feasible = True
            break
    return tb, need, feasible


def _fused_call(xp, wps, bps, pdims, tb, b_pad, vmem_need, in_bytes):
    n_layers = len(wps)
    grid = (b_pad // tb,)

    in_specs = [pl.BlockSpec((tb, pdims[0]), lambda i: (i, 0))]
    flat_args = [xp]
    for li in range(n_layers):
        flat_args += [wps[li], bps[li]]
        in_specs += [
            # Constant-index blocks: DMA'd once; Buffered(1) drops the default double-buffer
            # allocation so resident weight VMEM is halved.
            pl.BlockSpec((pdims[li], pdims[li + 1]), lambda i: (0, 0),
                         pipeline_mode=pl.Buffered(1)),
            pl.BlockSpec((1, pdims[li + 1]), lambda i: (0, 0),
                         pipeline_mode=pl.Buffered(1)),
        ]

    flops = 2 * b_pad * sum(pdims[i] * pdims[i + 1] for i in range(n_layers))
    bytes_accessed = (b_pad * pdims[0] * in_bytes
                      + sum(pdims[i] * pdims[i + 1] * 2 + pdims[i + 1] * 4
                            for i in range(n_layers))
                      + b_pad * pdims[-1] * 4)

    return pl.pallas_call(
        _make_fused_kernel(n_layers),
        out_shape=jax.ShapeDtypeStruct((b_pad, pdims[-1]), jnp.float32),
        grid=grid,
        in_specs=in_specs,
        out_specs=pl.BlockSpec((tb, pdims[-1]), lambda i: (i, 0)),
        compiler_params=pltpu.CompilerParams(
            dimension_semantics=("parallel",),          # batch tiles shard across v7x's 2 TCs
            vmem_limit_bytes=_vmem_limit_bytes(vmem_need),
        ),
        cost_estimate=pl.CostEstimate(flops=flops, transcendentals=0,
                                      bytes_accessed=bytes_accessed),
    )(*flat_args)


# ---------------------------------------------------------------------------
# Fallback: single linear layer with K-tiled (streamed) weights + f32 accumulator
# ---------------------------------------------------------------------------

def _ktiled_linear_kernel(apply_relu, x_ref, w_ref, b_ref, o_ref, acc_ref):
    k = pl.program_id(1)

    @pl.when(k == 0)
    def _():
        acc_ref[...] = jnp.zeros_like(acc_ref)

    acc_ref[...] += jnp.dot(x_ref[...].astype(jnp.bfloat16), w_ref[...],
                            preferred_element_type=jnp.float32)

    @pl.when(k == pl.num_programs(1) - 1)
    def _():
        r = acc_ref[...] + b_ref[...]
        if apply_relu:
            r = jnp.maximum(r, 0.0)
        o_ref[...] = r.astype(o_ref.dtype)


def _pick_ktile(b_padded, dinp, doutp, in_bytes, budget):
    def need_bytes(tb, tk):
        return (2 * tb * tk * in_bytes        # double-buffered x tiles
                + 2 * tk * doutp * 2          # double-buffered bf16 weight tiles
                + 2 * tb * doutp * 4          # double-buffered output tiles
                + tb * doutp * 4              # f32 accumulator scratch
                + doutp * 4)                  # resident bias

    for tb_c in (512, 256, 128, 64, 32, 16):
        tb = _round_up(max(min(tb_c, b_padded), SUBLANE), SUBLANE)
        for tk in (4096, 2048, 1024, 512, 256, 128):
            tk = min(tk, dinp)
            if dinp % tk:
                continue
            n = need_bytes(tb, tk)
            if n <= budget:
                return tb, tk, n
    tb, tk = SUBLANE, min(128, dinp)
    return tb, tk, need_bytes(tb, tk)


def _ktiled_linear(xp, wp, bp_row, apply_relu, out_dtype, budget):
    bpad, dinp = xp.shape
    doutp = wp.shape[1]
    in_bytes = jnp.dtype(xp.dtype).itemsize

    tb, tk, need = _pick_ktile(bpad, dinp, doutp, in_bytes, budget)
    if bpad >= 2 * SUBLANE:
        tb = min(tb, max(SUBLANE, _round_up(_cdiv(bpad, 4), SUBLANE)))
    b2 = _round_up(bpad, tb)
    if b2 != bpad:
        xp = jnp.pad(xp, ((0, b2 - bpad), (0, 0)))
    grid = (b2 // tb, dinp // tk)

    return pl.pallas_call(
        functools.partial(_ktiled_linear_kernel, apply_relu),
        out_shape=jax.ShapeDtypeStruct((b2, doutp), out_dtype),
        grid=grid,
        in_specs=[
            pl.BlockSpec((tb, tk), lambda i, k: (i, k)),
            pl.BlockSpec((tk, doutp), lambda i, k: (k, 0)),
            pl.BlockSpec((1, doutp), lambda i, k: (0, 0), pipeline_mode=pl.Buffered(1)),
        ],
        out_specs=pl.BlockSpec((tb, doutp), lambda i, k: (i, 0)),
        scratch_shapes=[pltpu.VMEM((tb, doutp), jnp.float32)],
        compiler_params=pltpu.CompilerParams(
            dimension_semantics=("parallel", "arbitrary"),
            vmem_limit_bytes=_vmem_limit_bytes(need),
        ),
    )(xp, wp, bp_row)


# ---------------------------------------------------------------------------
# Wrapper
# ---------------------------------------------------------------------------

@functools.partial(jax.jit, static_argnames=("num_classes",))
def mlp_forward(x, params, num_classes):
    """x: (B, ...); params: list of (W(in,out), b(out,)) (pre-transposed vs PyTorch)."""
    B = x.shape[0]
    x2d = x.reshape(B, -1)                    # torch.flatten(x, start_dim=1)
    in_size = x2d.shape[1]

    n_layers = len(params)
    dims = [in_size] + [int(w.shape[1]) for w, _ in params]
    pdims = [_round_up(d, LANE) for d in dims]

    budget = _vmem_budget_bytes()

    # Input feed policy: lane-aligned feature dim -> feed raw f32, cast to bf16 in-kernel
    # (4 B/elem of x HBM traffic). Otherwise pad+cast to bf16 in the wrapper (8 B/elem beats
    # an f32 pad prepass at 12 B/elem). Zero padding is semantics-preserving.
    if in_size % LANE == 0:
        x_in = x2d                                            # f32, no prepass
    else:
        x_in = jnp.pad(x2d.astype(jnp.bfloat16), ((0, 0), (0, pdims[0] - in_size)))
    in_bytes = jnp.dtype(x_in.dtype).itemsize

    b_pad0 = _round_up(max(B, SUBLANE), SUBLANE)

    # Pad/cast weights & biases (no-ops when already aligned). Padded cols/rows stay zero
    # through bias-add/ReLU, so results are exact modulo the documented bf16-matmul policy.
    wps, bps = [], []
    for li, (w, b) in enumerate(params):
        din, dout = dims[li], dims[li + 1]
        dinp, doutp = pdims[li], pdims[li + 1]
        wps.append(jnp.pad(w.astype(jnp.bfloat16), ((0, dinp - din), (0, doutp - dout))))
        bps.append(jnp.pad(b.astype(jnp.float32).reshape(1, -1), ((0, 0), (0, doutp - dout))))

    tb, vmem_need, feasible = _pick_batch_tile(b_pad0, pdims, n_layers, in_bytes,
                                               SUBLANE, budget)

    if feasible:
        # Keep >= ~4 grid steps when the batch allows it: both v7x TCs get work and the
        # input/output DMAs stay pipelined behind compute on all generations.
        if b_pad0 >= 2 * SUBLANE:
            tb = min(tb, max(SUBLANE, _round_up(_cdiv(b_pad0, 4), SUBLANE)))
        b_pad = _round_up(b_pad0, tb)
        xp = jnp.pad(x_in, ((0, b_pad - B), (0, 0)))
        out_padded = _fused_call(xp, wps, bps, pdims, tb, b_pad, vmem_need, in_bytes)
    else:
        # Resident weights alone don't fit VMEM (large flattened inputs on small-VMEM parts):
        # stream layer 0 with a K-tiled accumulator, then fuse the (small) tail if it fits.
        b_pad = _round_up(b_pad0, SUBLANE)
        xp = jnp.pad(x_in, ((0, b_pad - B), (0, 0)))
        h = _ktiled_linear(xp, wps[0], bps[0], apply_relu=(n_layers > 1),
                           out_dtype=(jnp.bfloat16 if n_layers > 1 else jnp.float32),
                           budget=budget)
        if n_layers == 1:
            out_padded = h
        else:
            tail_pdims = pdims[1:]
            tb2, need2, feas2 = _pick_batch_tile(h.shape[0], tail_pdims, n_layers - 1,
                                                 2, SUBLANE, budget)
            if feas2:
                if h.shape[0] >= 2 * SUBLANE:
                    tb2 = min(tb2, max(SUBLANE, _round_up(_cdiv(h.shape[0], 4), SUBLANE)))
                bp2 = _round_up(h.shape[0], tb2)
                if bp2 != h.shape[0]:
                    h = jnp.pad(h, ((0, bp2 - h.shape[0]), (0, 0)))
                out_padded = _fused_call(h, wps[1:], bps[1:], tail_pdims, tb2, bp2, need2, 2)
            else:
                # Last resort: every remaining layer K-tiled, one pallas_call per layer.
                for li in range(1, n_layers):
                    last = li == n_layers - 1
                    h = _ktiled_linear(h, wps[li], bps[li], apply_relu=not last,
                                       out_dtype=(jnp.float32 if last else jnp.bfloat16),
                                       budget=budget)
                out_padded = h

    return out_padded[:B, :num_classes]


# ---------------------------------------------------------------------------
# Params mirroring the PyTorch module, pure-JAX reference, smoke test
# ---------------------------------------------------------------------------

def init_mlp_params(input_size, hidden_size, num_classes, hidden_count, key):
    """Weights: torch.nn.init.ones_ (module default initializer) -> all ones.
    Biases: PyTorch Linear default U(-1/sqrt(fan_in), 1/sqrt(fan_in)), reproduced from key.
    Stored pre-transposed as (in_features, out_features)."""
    dims = [input_size] + [hidden_size] * hidden_count + [num_classes]
    params = []
    for fan_in, fan_out in zip(dims[:-1], dims[1:]):
        key, bk = jax.random.split(key)
        bound = 1.0 / (fan_in ** 0.5)
        w = jnp.ones((fan_in, fan_out), jnp.float32)
        b = jax.random.uniform(bk, (fan_out,), jnp.float32, -bound, bound)
        params.append((w, b))
    return params


def mlp_reference(x, params):
    """Pure-JAX reference with the same numerical policy (bf16 matmul, f32 accumulate)."""
    h = x.reshape(x.shape[0], -1).astype(jnp.bfloat16)
    out = None
    for i, (w, b) in enumerate(params):
        acc = jnp.dot(h, w.astype(jnp.bfloat16), preferred_element_type=jnp.float32) + b
        if i < len(params) - 1:
            h = jnp.maximum(acc, 0.0).astype(jnp.bfloat16)
        else:
            out = acc
    return out


if __name__ == "__main__":
    batch, channels, spatial = 2, 4, 16
    input_size = channels * spatial * spatial  # 1024 (lane-aligned -> direct f32 feed)
    hidden_size = 32
    num_classes = 10
    hidden_count = 2

    key = jax.random.PRNGKey(0)
    key, xk = jax.random.split(key)
    x = jax.random.normal(xk, (batch, channels, spatial, spatial), jnp.float32)

    params = init_mlp_params(input_size, hidden_size, num_classes, hidden_count, key)

    out = mlp_forward(x, params, num_classes)
    out = jax.block_until_ready(out)

    ref = mlp_reference(x, params)
    assert out.shape == (batch, num_classes), out.shape
    assert jnp.allclose(out, ref, rtol=1e-3, atol=1e-2), (
        "mismatch vs reference, max abs err = %f" % float(jnp.max(jnp.abs(out - ref))))

    print("KERNEL_OK")
</pallas_src>

<mosaic_0001>
module attributes {stable_mosaic.version = 11 : i64} {
  func.func @kernel(%arg0: i32, %arg1: memref<16x1024xf32, #tpu.memory_space<vmem>>, %arg2: memref<1024x128xbf16, #tpu.memory_space<vmem>>, %arg3: memref<1x128xf32, #tpu.memory_space<vmem>>, %arg4: memref<128x128xbf16, #tpu.memory_space<vmem>>, %arg5: memref<1x128xf32, #tpu.memory_space<vmem>>, %arg6: memref<128x128xbf16, #tpu.memory_space<vmem>>, %arg7: memref<1x128xf32, #tpu.memory_space<vmem>>, %arg8: memref<16x128xf32, #tpu.memory_space<vmem>>) attributes {dimension_semantics = [#tpu.dimension_semantics<parallel>], iteration_bounds = array<i64: 1>, scalar_prefetch = 0 : i64, scratch_operands = 0 : i64, tpu.core_type = #tpu.core_type<tc>, window_params = [{transform_indices = @transform_0, window_bounds = array<i64: 16, 1024>}, {pipeline_mode = #tpu.pipeline_mode<synchronous>, transform_indices = @transform_1, window_bounds = array<i64: 1024, 128>}, {pipeline_mode = #tpu.pipeline_mode<synchronous>, transform_indices = @transform_2, window_bounds = array<i64: 1, 128>}, {pipeline_mode = #tpu.pipeline_mode<synchronous>, transform_indices = @transform_3, window_bounds = array<i64: 128, 128>}, {pipeline_mode = #tpu.pipeline_mode<synchronous>, transform_indices = @transform_4, window_bounds = array<i64: 1, 128>}, {pipeline_mode = #tpu.pipeline_mode<synchronous>, transform_indices = @transform_5, window_bounds = array<i64: 128, 128>}, {pipeline_mode = #tpu.pipeline_mode<synchronous>, transform_indices = @transform_6, window_bounds = array<i64: 1, 128>}, {transform_indices = @transform_7, window_bounds = array<i64: 16, 128>}]} {
    %c0 = arith.constant 0 : index
    %c0_0 = arith.constant 0 : index
    %0 = vector.load %arg1[%c0, %c0_0] : memref<16x1024xf32, #tpu.memory_space<vmem>>, vector<16x1024xf32>
    %1 = arith.truncf %0 : vector<16x1024xf32> to vector<16x1024xbf16>
    %c0_1 = arith.constant 0 : index
    %c0_2 = arith.constant 0 : index
    %2 = vector.load %arg2[%c0_1, %c0_2] : memref<1024x128xbf16, #tpu.memory_space<vmem>>, vector<1024x128xbf16>
    %c0_3 = arith.constant 0 : index
    %c0_4 = arith.constant 0 : index
    %3 = vector.load %arg3[%c0_3, %c0_4] : memref<1x128xf32, #tpu.memory_space<vmem>>, vector<1x128xf32>
    %cst = arith.constant dense<0.000000e+00> : vector<16x128xf32>
    %4 = tpu.matmul %1, %2, %cst {dimension_numbers = #tpu.dot_dimension_numbers<[1], [0], [0], [1], [0, 0, 1, 1], [], []>} : vector<16x1024xbf16>, vector<1024x128xbf16>, vector<16x128xf32> -> vector<16x128xf32>
    %5 = vector.broadcast %3 : vector<1x128xf32> to vector<16x128xf32>
    %6 = arith.addf %4, %5 : vector<16x128xf32>
    %cst_5 = arith.constant 0.000000e+00 : f32
    %7 = vector.broadcast %cst_5 : f32 to vector<16x128xf32>
    %8 = arith.maximumf %6, %7 : vector<16x128xf32>
    %9 = arith.truncf %8 : vector<16x128xf32> to vector<16x128xbf16>
    %c0_6 = arith.constant 0 : index
    %c0_7 = arith.constant 0 : index
    %10 = vector.load %arg4[%c0_6, %c0_7] : memref<128x128xbf16, #tpu.memory_space<vmem>>, vector<128x128xbf16>
    %c0_8 = arith.constant 0 : index
    %c0_9 = arith.constant 0 : index
    %11 = vector.load %arg5[%c0_8, %c0_9] : memref<1x128xf32, #tpu.memory_space<vmem>>, vector<1x128xf32>
    %cst_10 = arith.constant dense<0.000000e+00> : vector<16x128xf32>
    %12 = tpu.matmul %9, %10, %cst_10 {dimension_numbers = #tpu.dot_dimension_numbers<[1], [0], [0], [1], [0, 0, 1, 1], [], []>} : vector<16x128xbf16>, vector<128x128xbf16>, vector<16x128xf32> -> vector<16x128xf32>
    %13 = vector.broadcast %11 : vector<1x128xf32> to vector<16x128xf32>
    %14 = arith.addf %12, %13 : vector<16x128xf32>
    %cst_11 = arith.constant 0.000000e+00 : f32
    %15 = vector.broadcast %cst_11 : f32 to vector<16x128xf32>
    %16 = arith.maximumf %14, %15 : vector<16x128xf32>
    %17 = arith.truncf %16 : vector<16x128xf32> to vector<16x128xbf16>
    %c0_12 = arith.constant 0 : index
    %c0_13 = arith.constant 0 : index
    %18 = vector.load %arg6[%c0_12, %c0_13] : memref<128x128xbf16, #tpu.memory_space<vmem>>, vector<128x128xbf16>
    %c0_14 = arith.constant 0 : index
    %c0_15 = arith.constant 0 : index
    %19 = vector.load %arg7[%c0_14, %c0_15] : memref<1x128xf32, #tpu.memory_space<vmem>>, vector<1x128xf32>
    %cst_16 = arith.constant dense<0.000000e+00> : vector<16x128xf32>
    %20 = tpu.matmul %17, %18, %cst_16 {dimension_numbers = #tpu.dot_dimension_numbers<[1], [0], [0], [1], [0, 0, 1, 1], [], []>} : vector<16x128xbf16>, vector<128x128xbf16>, vector<16x128xf32> -> vector<16x128xf32>
    %21 = vector.broadcast %19 : vector<1x128xf32> to vector<16x128xf32>
    %22 = arith.addf %20, %21 : vector<16x128xf32>
    %c0_17 = arith.constant 0 : index
    %c0_18 = arith.constant 0 : index
    %23 = vector.load %arg8[%c0_17, %c0_18] : memref<16x128xf32, #tpu.memory_space<vmem>>, vector<16x128xf32>
    tpu.vector_store %arg8[%c0_17, %c0_18], %22 {strides = array<i32>} : memref<16x128xf32, #tpu.memory_space<vmem>>, vector<16x128xf32>,
    return
  }
  func.func @transform_0(%arg0: i32) -> (i32, i32) {
    %c0_i32 = arith.constant 0 : i32
    %c0_i32_0 = arith.constant 0 : i32
    return %arg0, %c0_i32 : i32, i32
  }
  func.func @transform_1(%arg0: i32) -> (i32, i32) {
    %c0_i32 = arith.constant 0 : i32
    %c0_i32_0 = arith.constant 0 : i32
    %c0_i32_1 = arith.constant 0 : i32
    return %c0_i32, %c0_i32_0 : i32, i32
  }
  func.func @transform_2(%arg0: i32) -> (i32, i32) {
    %c0_i32 = arith.constant 0 : i32
    %c0_i32_0 = arith.constant 0 : i32
    %c0_i32_1 = arith.constant 0 : i32
    return %c0_i32, %c0_i32_0 : i32, i32
  }
  func.func @transform_3(%arg0: i32) -> (i32, i32) {
    %c0_i32 = arith.constant 0 : i32
    %c0_i32_0 = arith.constant 0 : i32
    %c0_i32_1 = arith.constant 0 : i32
    return %c0_i32, %c0_i32_0 : i32, i32
  }
  func.func @transform_4(%arg0: i32) -> (i32, i32) {
    %c0_i32 = arith.constant 0 : i32
    %c0_i32_0 = arith.constant 0 : i32
    %c0_i32_1 = arith.constant 0 : i32
    return %c0_i32, %c0_i32_0 : i32, i32
  }
  func.func @transform_5(%arg0: i32) -> (i32, i32) {
    %c0_i32 = arith.constant 0 : i32
    %c0_i32_0 = arith.constant 0 : i32
    %c0_i32_1 = arith.constant 0 : i32
    return %c0_i32, %c0_i32_0 : i32, i32
  }
  func.func @transform_6(%arg0: i32) -> (i32, i32) {
    %c0_i32 = arith.constant 0 : i32
    %c0_i32_0 = arith.constant 0 : i32
    %c0_i32_1 = arith.constant 0 : i32
    return %c0_i32, %c0_i32_0 : i32, i32
  }
  func.func @transform_7(%arg0: i32) -> (i32, i32) {
    %c0_i32 = arith.constant 0 : i32
    %c0_i32_0 = arith.constant 0 : i32
    return %arg0, %c0_i32 : i32, i32
  }
}

</mosaic_0001>

<bundles_post_ra>
// kernel: mlp_forward.1
= control target key start
LH: loop header
LB: loop body
LE: loop exit
PB: predicated region body
PF: predicated region fallthrough
CT: control target
= control target key end

     0   :  { %s1600_s1 = inlined_call_operand.vmem [shape: bf16[1024,128], index: 1, kind: input, shape index: {}]   ;;  %s1601_s2 = inlined_call_operand.vmem [shape: f32[1,128], index: 2, kind: input, shape index: {}]   ;;  %s1602_s0 = inlined_call_operand.vmem [shape: f32[16,1024], index: 0, kind: input, shape index: {}]   ;;  %s1603_s4 = inlined_call_operand.vmem [shape: f32[1,128], index: 4, kind: input, shape index: {}]   ;;  %s1604_s3 = inlined_call_operand.vmem [shape: bf16[128,128], index: 3, kind: input, shape index: {}]   ;;  %s1605_s5 = inlined_call_operand.vmem [shape: bf16[128,128], index: 5, kind: input, shape index: {}]   ;;  %s1606_s6 = inlined_call_operand.vmem [shape: f32[1,128], index: 6, kind: input, shape index: {}]   ;;  %s1607_s7 = inlined_call_operand.vmem [shape: f32[16,128], index: 7, kind: output, shape index: {}]  }
   0x1   :  { %v1181_v0 = vld [vmem:[%s1600_s1 + $0x38] sm:$0xff]  ;;  %v1180_v4 = vld [vmem:[%s1600_s1 + $0x30] sm:$0xff]  ;;  %v1179_v8 = vld [vmem:[%s1600_s1 + $0x28] sm:$0xff] }
   0x2   :  { %v1189_v1 = vld [vmem:[%s1600_s1 + $0x78] sm:$0xff]  ;;  %566 = vmatpush.bf16.msra.mxu0 %v1181_v0  ;;  %v1188_v5 = vld [vmem:[%s1600_s1 + $0x70] sm:$0xff]  ;;  %v1187_v9 = vld [vmem:[%s1600_s1 + $0x68] sm:$0xff] }
   0x3   :  { %v1197_v2 = vld [vmem:[%s1600_s1 + $0xb8] sm:$0xff]  ;;  %580 = vmatpush.bf16.msra.mxu1 %v1189_v1  ;;  %v1196_v6 = vld [vmem:[%s1600_s1 + $0xb0] sm:$0xff]  ;;  %v1195_v10 = vld [vmem:[%s1600_s1 + $0xa8] sm:$0xff] }
   0x4   :  { %v1205_v3 = vld [vmem:[%s1600_s1 + $0xf8] sm:$0xff]  ;;  %594 = vmatpush.bf16.msra.mxu2 %v1197_v2  ;;  %v1204_v7 = vld [vmem:[%s1600_s1 + $0xf0] sm:$0xff]  ;;  %v1203_v11 = vld [vmem:[%s1600_s1 + $0xe8] sm:$0xff] }
   0x5   :  { %608 = vmatpush.bf16.msra.mxu3 %v1205_v3  ;;  %v1178_v12 = vld [vmem:[%s1600_s1 + $0x20] sm:$0xff]  ;;  %v1177_v16 = vld [vmem:[%s1600_s1 + $0x18] sm:$0xff]  ;;  %v1176_v20 = vld [vmem:[%s1600_s1 + $0x10] sm:$0xff] }
   0x6   :  { %567 = vmatpush.bf16.msra.mxu0 %v1180_v4  ;;  %v1186_v13 = vld [vmem:[%s1600_s1 + $0x60] sm:$0xff]  ;;  %v1185_v17 = vld [vmem:[%s1600_s1 + $0x58] sm:$0xff]  ;;  %v1184_v21 = vld [vmem:[%s1600_s1 + $0x50] sm:$0xff] }
   0x7   :  { %581 = vmatpush.bf16.msra.mxu1 %v1188_v5  ;;  %v1194_v14 = vld [vmem:[%s1600_s1 + $0xa0] sm:$0xff]  ;;  %v1193_v18 = vld [vmem:[%s1600_s1 + $0x98] sm:$0xff]  ;;  %v1192_v22 = vld [vmem:[%s1600_s1 + $0x90] sm:$0xff] }
   0x8   :  { %595 = vmatpush.bf16.msra.mxu2 %v1196_v6  ;;  %v1202_v15 = vld [vmem:[%s1600_s1 + $0xe0] sm:$0xff]  ;;  %v1201_v19 = vld [vmem:[%s1600_s1 + $0xd8] sm:$0xff]  ;;  %v1200_v23 = vld [vmem:[%s1600_s1 + $0xd0] sm:$0xff] }
   0x9   :  { %609 = vmatpush.bf16.msra.mxu3 %v1204_v7  ;;  %v1175_v24 = vld [vmem:[%s1600_s1 + $0x8] sm:$0xff]  ;;  %v1174_v28 = vld [vmem:[%s1600_s1] sm:$0xff]  ;;  %v1213_v32 = vld [vmem:[%s1600_s1 + $0x138] sm:$0xff] }
   0xa   :  { %568 = vmatpush.bf16.msra.mxu0 %v1179_v8  ;;  %v1183_v25 = vld [vmem:[%s1600_s1 + $0x48] sm:$0xff]  ;;  %v1182_v29 = vld [vmem:[%s1600_s1 + $0x40] sm:$0xff]  ;;  %v1221_v33 = vld [vmem:[%s1600_s1 + $0x178] sm:$0xff] }
   0xb   :  { %582 = vmatpush.bf16.msra.mxu1 %v1187_v9  ;;  %v1191_v26 = vld [vmem:[%s1600_s1 + $0x88] sm:$0xff]  ;;  %v1190_v30 = vld [vmem:[%s1600_s1 + $0x80] sm:$0xff]  ;;  %v28_v34 = vld [vmem:[%s1602_s0 + $0x10] sm:$0xff] }
   0xc   :  { %596 = vmatpush.bf16.msra.mxu2 %v1195_v10  ;;  %v1199_v27 = vld [vmem:[%s1600_s1 + $0xc8] sm:$0xff]  ;;  %v1198_v31 = vld [vmem:[%s1600_s1 + $0xc0] sm:$0xff]  ;;  %v36_v35 = vld [vmem:[%s1602_s0 + $0x50] sm:$0xff] }
   0xd   :  { %610 = vmatpush.bf16.msra.mxu3 %v1203_v11  ;;  %v26_v36 = vld [vmem:[%s1602_s0] sm:$0xff]  ;;  %v29_v38 = vld [vmem:[%s1602_s0 + $0x18] sm:$0xff]  ;;  %v27_v40 = vld [vmem:[%s1602_s0 + $0x8] sm:$0xff]  ;;  %v44_v44 = vpack.c.bf16 %v36_v35, %v28_v34 }
   0xe   :  { %569 = vmatpush.bf16.msra.mxu0 %v1178_v12  ;;  %v34_v37 = vld [vmem:[%s1602_s0 + $0x40] sm:$0xff]  ;;  %v37_v39 = vld [vmem:[%s1602_s0 + $0x58] sm:$0xff]  ;;  %v35_v41 = vld [vmem:[%s1602_s0 + $0x48] sm:$0xff] }
   0xf   :  { %583 = vmatpush.bf16.msra.mxu1 %v1186_v13  ;;  %v1229_v42 = vld [vmem:[%s1600_s1 + $0x1b8] sm:$0xff]  ;;  %v42_v45 = vpack.c.bf16 %v34_v37, %v26_v36  ;;  %v45_v46 = vpack.c.bf16 %v37_v39, %v29_v38  ;;  %v43_v47 = vpack.c.bf16 %v35_v41, %v27_v40  ;;  %v1212_v48 = vld [vmem:[%s1600_s1 + $0x130] sm:$0xff]  ;;  %v1211_v52 = vld [vmem:[%s1600_s1 + $0x128] sm:$0xff] }
  0x10   :  { %597 = vmatpush.bf16.msra.mxu2 %v1194_v14  ;;  %v1237_v43 = vld [vmem:[%s1600_s1 + $0x1f8] sm:$0xff]  ;;  %v1220_v49 = vld [vmem:[%s1600_s1 + $0x170] sm:$0xff]  ;;  %v1219_v53 = vld [vmem:[%s1600_s1 + $0x168] sm:$0xff] }
  0x11   :  { %611 = vmatpush.bf16.msra.mxu3 %v1202_v15  ;;  %v1228_v50 = vld [vmem:[%s1600_s1 + $0x1b0] sm:$0xff]  ;;  %v1227_v54 = vld [vmem:[%s1600_s1 + $0x1a8] sm:$0xff]  ;;  %v1210_v56 = vld [vmem:[%s1600_s1 + $0x120] sm:$0xff] }
  0x12   :  { %570 = vmatpush.bf16.msra.mxu0 %v1177_v16  ;;  %v1236_v51 = vld [vmem:[%s1600_s1 + $0x1f0] sm:$0xff]  ;;  %v1235_v55 = vld [vmem:[%s1600_s1 + $0x1e8] sm:$0xff]  ;;  %v1218_v57 = vld [vmem:[%s1600_s1 + $0x160] sm:$0xff] }
  0x13   :  { %584 = vmatpush.bf16.msra.mxu1 %v1185_v17  ;;  %v1226_v58 = vld [vmem:[%s1600_s1 + $0x1a0] sm:$0xff]  ;;  %v1209_v60 = vld [vmem:[%s1600_s1 + $0x118] sm:$0xff]  ;;  %v1208_v0 = vld [vmem:[%s1600_s1 + $0x110] sm:$0xff] }
  0x14   :  { %598 = vmatpush.bf16.msra.mxu2 %v1193_v18  ;;  %v1234_v59 = vld [vmem:[%s1600_s1 + $0x1e0] sm:$0xff]  ;;  %v1217_v61 = vld [vmem:[%s1600_s1 + $0x158] sm:$0xff]  ;;  %v1216_v1 = vld [vmem:[%s1600_s1 + $0x150] sm:$0xff] }
  0x15   :  { %612 = vmatpush.bf16.msra.mxu3 %v1201_v19  ;;  %v1225_v62 = vld [vmem:[%s1600_s1 + $0x198] sm:$0xff]  ;;  %v1224_v2 = vld [vmem:[%s1600_s1 + $0x190] sm:$0xff]  ;;  %v1207_v4 = vld [vmem:[%s1600_s1 + $0x108] sm:$0xff] }
  0x16   :  { %571 = vmatpush.bf16.msra.mxu0 %v1176_v20  ;;  %v1233_v63 = vld [vmem:[%s1600_s1 + $0x1d8] sm:$0xff]  ;;  %v1232_v3 = vld [vmem:[%s1600_s1 + $0x1d0] sm:$0xff]  ;;  %v1215_v5 = vld [vmem:[%s1600_s1 + $0x148] sm:$0xff] }
  0x17   :  { %585 = vmatpush.bf16.msra.mxu1 %v1184_v21  ;;  %v1223_v6 = vld [vmem:[%s1600_s1 + $0x188] sm:$0xff]  ;;  %v1206_v8 = vld [vmem:[%s1600_s1 + $0x100] sm:$0xff]  ;;  %v32_v16 = vld [vmem:[%s1602_s0 + $0x30] sm:$0xff] }
  0x18   :  { %599 = vmatpush.bf16.msra.mxu2 %v1192_v22  ;;  %v1231_v7 = vld [vmem:[%s1600_s1 + $0x1c8] sm:$0xff]  ;;  %v1214_v9 = vld [vmem:[%s1600_s1 + $0x140] sm:$0xff]  ;;  %v40_v17 = vld [vmem:[%s1602_s0 + $0x70] sm:$0xff] }
  0x19   :  { %613 = vmatpush.bf16.msra.mxu3 %v1200_v23  ;;  %v1222_v10 = vld [vmem:[%s1600_s1 + $0x180] sm:$0xff]  ;;  %v31_v14 = vld [vmem:[%s1602_s0 + $0x28] sm:$0xff]  ;;  %v33_v18 = vld [vmem:[%s1602_s0 + $0x38] sm:$0xff]  ;;  %v48_v22 = vpack.c.bf16 %v40_v17, %v32_v16 }
  0x1a   :  { %572 = vmatpush.bf16.msra.mxu0 %v1175_v24  ;;  %v1230_v11 = vld [vmem:[%s1600_s1 + $0x1c0] sm:$0xff]  ;;  %v39_v15 = vld [vmem:[%s1602_s0 + $0x68] sm:$0xff]  ;;  %v41_v19 = vld [vmem:[%s1602_s0 + $0x78] sm:$0xff] }
  0x1b   :  { %586 = vmatpush.bf16.msra.mxu1 %v1183_v25  ;;  %v30_v12 = vld [vmem:[%s1602_s0 + $0x20] sm:$0xff]  ;;  %v47_v21 = vpack.c.bf16 %v39_v15, %v31_v14  ;;  %v49_v23 = vpack.c.bf16 %v41_v19, %v33_v18  ;;  %v1245_v24 = vld [vmem:[%s1604_s3 + $0x38] sm:$0xff]  ;;  %v1244_v25 = vld [vmem:[%s1604_s3 + $0x30] sm:$0xff] }
  0x1c   :  { %600 = vmatpush.bf16.msra.mxu2 %v1191_v26  ;;  %v38_v13 = vld [vmem:[%s1602_s0 + $0x60] sm:$0xff]  ;;  %v1243_v26 = vld [vmem:[%s1604_s3 + $0x28] sm:$0xff]  ;;  %v1253_v39 = vld [vmem:[%s1605_s5 + $0x38] sm:$0xff] }
  0x1d   :  { %614 = vmatpush.bf16.msra.mxu3 %v1199_v27  ;;  %v46_v20 = vpack.c.bf16 %v38_v13, %v30_v12  ;;  %v1242_v27 = vld [vmem:[%s1604_s3 + $0x20] sm:$0xff]  ;;  %v1252_v40 = vld [vmem:[%s1605_s5 + $0x30] sm:$0xff] }
  0x1e   :  { %573 = vmatpush.bf16.msra.mxu0 %v1174_v28  ;;  %v1241_v28 = vld [vmem:[%s1604_s3 + $0x18] sm:$0xff]  ;;  %v1254_v34 = vld [vmem:[%s1601_s2] ss:$0 sm:$0xff] }
  0x1f   :  { %587 = vmatpush.bf16.msra.mxu1 %v1182_v29  ;;  %v1240_v29 = vld [vmem:[%s1604_s3 + $0x10] sm:$0xff]  ;;  %v1255_v13 = vld [vmem:[%s1603_s4] ss:$0 sm:$0xff] }
  0x20   :  { %601 = vmatpush.bf16.msra.mxu2 %v1190_v30 }
  0x21   :  { %615 = vmatpush.bf16.msra.mxu3 %v1198_v31  ;;  %574 = vmatmul.bf16.vlgmr.msra.gmra.mxu0 %v42_v45  ;;  %v1239_v31 = vld [vmem:[%s1604_s3 + $0x8] sm:$0xff] }
  0x22   :  { %622 = vmatpush.bf16.msrb.mxu0 %v1213_v32  ;;  %588 = vmatmul.bf16.vlgmr.msra.gmra.mxu1 %v43_v47 }
  0x23   :  { %636 = vmatpush.bf16.msrb.mxu1 %v1221_v33  ;;  %602 = vmatmul.bf16.vlgmr.msra.gmra.mxu2 %v44_v44  ;;  %v1238_v33 = vld [vmem:[%s1604_s3] sm:$0xff]  ;;  %v1251_v44 = vld [vmem:[%s1605_s5 + $0x28] sm:$0xff] }
  0x24   :  { %650 = vmatpush.bf16.msrb.mxu2 %v1229_v42  ;;  %616 = vmatmul.bf16.vlgmr.msra.gmra.mxu3 %v45_v46 }
  0x25   :  { %664 = vmatpush.bf16.msrb.mxu3 %v1237_v43 }
  0x26   :  { %623 = vmatpush.bf16.msrb.mxu0 %v1212_v48 }
  0x27   :  { %637 = vmatpush.bf16.msrb.mxu1 %v1220_v49 }
  0x28   :  { %651 = vmatpush.bf16.msrb.mxu2 %v1228_v50  ;;  %v1250_v50 = vld [vmem:[%s1605_s5 + $0x20] sm:$0xff] }
  0x29   :  { %665 = vmatpush.bf16.msrb.mxu3 %v1236_v51 }
  0x2a   :  { %624 = vmatpush.bf16.msrb.mxu0 %v1211_v52 }
  0x2b   :  { %638 = vmatpush.bf16.msrb.mxu1 %v1219_v53 }
  0x2c   :  { %652 = vmatpush.bf16.msrb.mxu2 %v1227_v54 }
  0x2d   :  { %666 = vmatpush.bf16.msrb.mxu3 %v1235_v55 }
  0x2e   :  { %625 = vmatpush.bf16.msrb.mxu0 %v1210_v56 }
  0x2f   :  { %639 = vmatpush.bf16.msrb.mxu1 %v1218_v57 }
  0x30   :  { %653 = vmatpush.bf16.msrb.mxu2 %v1226_v58 }
  0x31   :  { %667 = vmatpush.bf16.msrb.mxu3 %v1234_v59 }
  0x32   :  { %626 = vmatpush.bf16.msrb.mxu0 %v1209_v60 }
  0x33   :  { %640 = vmatpush.bf16.msrb.mxu1 %v1217_v61 }
  0x34   :  { %654 = vmatpush.bf16.msrb.mxu2 %v1225_v62 }
  0x35   :  { %668 = vmatpush.bf16.msrb.mxu3 %v1233_v63 }
  0x36   :  { %627 = vmatpush.bf16.msrb.mxu0 %v1208_v0 }
  0x37   :  { %641 = vmatpush.bf16.msrb.mxu1 %v1216_v1 }
  0x38   :  { %655 = vmatpush.bf16.msrb.mxu2 %v1224_v2 }
  0x39   :  { %669 = vmatpush.bf16.msrb.mxu3 %v1232_v3 }
  0x3a   :  { %628 = vmatpush.bf16.msrb.mxu0 %v1207_v4 }
  0x3b   :  { %642 = vmatpush.bf16.msrb.mxu1 %v1215_v5 }
  0x3c   :  { %656 = vmatpush.bf16.msrb.mxu2 %v1223_v6 }
  0x3d   :  { %670 = vmatpush.bf16.msrb.mxu3 %v1231_v7 }
  0x3e   :  { %629 = vmatpush.bf16.msrb.mxu0 %v1206_v8  ;;  %v1249_v8 = vld [vmem:[%s1605_s5 + $0x18] sm:$0xff] }
  0x3f   :  { %643 = vmatpush.bf16.msrb.mxu1 %v1214_v9  ;;  %v1248_v9 = vld [vmem:[%s1605_s5 + $0x10] sm:$0xff] }
  0x40   :  { %657 = vmatpush.bf16.msrb.mxu2 %v1222_v10  ;;  %v1247_v10 = vld [vmem:[%s1605_s5 + $0x8] sm:$0xff] }
  0x41   :  { %671 = vmatpush.bf16.msrb.mxu3 %v1230_v11  ;;  %630 = vmatmul.bf16.vlgmr.msrb.gmra.mxu0 %v46_v20  ;;  %v1246_v11 = vld [vmem:[%s1605_s5] sm:$0xff] }
  0x42   :  { %644 = vmatmul.bf16.vlgmr.msrb.gmra.mxu1 %v47_v21  ;;  %749 = vmatpush.bf16.msra.mxu0 %v1245_v24  ;;  %v1256_v20 = vld [vmem:[%s1606_s6] ss:$0 sm:$0xff] }
  0x43   :  { %658 = vmatmul.bf16.vlgmr.msrb.gmra.mxu2 %v48_v22  ;;  %834 = vmatpush.bf16.msra.mxu1 %v1253_v39 }
  0x44   :  { %672 = vmatmul.bf16.vlgmr.msrb.gmra.mxu3 %v49_v23 }
  0x46   :  { %750 = vmatpush.bf16.msra.mxu0 %v1244_v25 }
  0x47   :  { %835 = vmatpush.bf16.msra.mxu1 %v1252_v40 }
  0x4a   :  { %751 = vmatpush.bf16.msra.mxu0 %v1243_v26 }
  0x4b   :  { %836 = vmatpush.bf16.msra.mxu1 %v1251_v44 }
  0x4e   :  { %752 = vmatpush.bf16.msra.mxu0 %v1242_v27 }
  0x4f   :  { %837 = vmatpush.bf16.msra.mxu1 %v1250_v50 }
  0x52   :  { %753 = vmatpush.bf16.msra.mxu0 %v1241_v28 }
  0x53   :  { %838 = vmatpush.bf16.msra.mxu1 %v1249_v8 }
  0x56   :  { %754 = vmatpush.bf16.msra.mxu0 %v1240_v29 }
  0x57   :  { %839 = vmatpush.bf16.msra.mxu1 %v1248_v9 }
  0x5a   :  { %755 = vmatpush.bf16.msra.mxu0 %v1239_v31 }
  0x5b   :  { %840 = vmatpush.bf16.msra.mxu1 %v1247_v10 }
  0x5e   :  { %756 = vmatpush.bf16.msra.mxu0 %v1238_v33 }
  0x5f   :  { %841 = vmatpush.bf16.msra.mxu1 %v1246_v11 }
  0x9e   :  { %v575_v30 = vpop.f32.mrf.mxu0 }
  0x9f   :  { %v589_v32 = vpop.f32.mrf.mxu1  ;;  %v576_v37 = vadd.f32 %v1254_v34, %v575_v30 }
  0xa1   :  { %v590_v42 = vadd.f32 %v589_v32, %v576_v37 }
  0xa6   :  { %v603_v35 = vpop.f32.mrf.mxu2  ;;  %v577_v38 = vpop.f32.mrf.mxu0 }
  0xa7   :  { %v617_v36 = vpop.f32.mrf.mxu3  ;;  %v591_v41 = vpop.f32.mrf.mxu1  ;;  %v578_v43 = vadd.f32 %v1254_v34, %v577_v38  ;;  %v604_v47 = vadd.f32 %v603_v35, %v590_v42 }
  0xa9   :  { %v592_v48 = vadd.f32 %v591_v41, %v578_v43  ;;  %v618_v52 = vadd.f32 %v617_v36, %v604_v47 }
  0xae   :  { %v605_v45 = vpop.f32.mrf.mxu2 }
  0xaf   :  { %v619_v46 = vpop.f32.mrf.mxu3  ;;  %v606_v53 = vadd.f32 %v605_v45, %v592_v48 }
  0xb1   :  { %v620_v57 = vadd.f32 %v619_v46, %v606_v53 }
  0xbe   :  { %v631_v49 = vpop.f32.mrf.mxu0 }
  0xbf   :  { %v645_v51 = vpop.f32.mrf.mxu1  ;;  %v632_v54 = vadd.f32 %v631_v49, %v618_v52 }
  0xc1   :  { %v646_v59 = vadd.f32 %v645_v51, %v632_v54 }
  0xc6   :  { %v659_v55 = vpop.f32.mrf.mxu2  ;;  %v633_v58 = vpop.f32.mrf.mxu0 }
  0xc7   :  { %v673_v56 = vpop.f32.mrf.mxu3  ;;  %v634_v60 = vadd.f32 %v633_v58, %v620_v57  ;;  %v660_v61 = vadd.f32 %v659_v55, %v646_v59  ;;  %v647_v62 = vpop.f32.mrf.mxu1 }
  0xc9   :  { %v648_v63 = vadd.f32 %v647_v62, %v634_v60  ;;  %v674_v1 = vadd.f32 %v673_v56, %v660_v61 }
  0xcb   :  { %v678_v5 = vmax.f32 %v674_v1, 0.0 }
  0xce   :  { %v661_v0 = vpop.f32.mrf.mxu2 }
  0xcf   :  { %v662_v2 = vadd.f32 %v661_v0, %v648_v63  ;;  %v675_v3 = vpop.f32.mrf.mxu3 }
  0xd1   :  { %v676_v4 = vadd.f32 %v675_v3, %v662_v2 }
  0xd3   :  { %v679_v6 = vmax.f32 %v676_v4, 0.0 }
  0xd5   :  { %v680_v7 = vpack.c.bf16 %v679_v6, %v678_v5 }
  0xd7   :  { %757 = vmatmul.bf16.vlgmr.msra.gmra.mxu0 %v680_v7 }
 0x154   :  { %v758_v12 = vpop.f32.mrf.mxu0 }
 0x155   :  { %v759_v14 = vadd.f32 %v1255_v13, %v758_v12 }
 0x157   :  { %v763_v17 = vmax.f32 %v759_v14, 0.0 }
 0x15c   :  { %v760_v15 = vpop.f32.mrf.mxu0 }
 0x15d   :  { %v761_v16 = vadd.f32 %v1255_v13, %v760_v15 }
 0x15f   :  { %v764_v18 = vmax.f32 %v761_v16, 0.0 }
 0x161   :  { %v765_v19 = vpack.c.bf16 %v764_v18, %v763_v17 }
 0x163   :  { %842 = vmatmul.bf16.vlgmr.msra.gmra.mxu1 %v765_v19 }
 0x1e0   :  { %v843_v21 = vpop.f32.mrf.mxu1 }
 0x1e1   :  { %v844_v22 = vadd.f32 %v1256_v20, %v843_v21 }
 0x1e3   :  { %848 = vst [vmem:[%s1607_s7] sm:$0xff] %v844_v22 }
 0x1e8   :  { %v845_v23 = vpop.f32.mrf.mxu1 }
 0x1e9   :  { %v846_v24 = vadd.f32 %v1256_v20, %v845_v23 }
 0x1eb   :  { %849 = vst [vmem:[%s1607_s7 + $0x8] sm:$0xff] %v846_v24 }

</bundles_post_ra>
